<compile_context>
chip_gen: v7x
topology: tpu7x:2x2x1
jax: 0.10.0
libtpu: 0.0.40
codegen_flags: <defaults>
</compile_context>

<pallas_src>
import jax
import jax.numpy as jnp
from jax.experimental import pallas as pl
from jax.experimental.pallas import tpu as pltpu

# Module hyperparameters (module __init__ constants)
CONTEXT_SIZE = 16
EMBEDDING_DIM = 32
PE_N = 10000.0

# Below this many elements the per-pallas_call overhead dominates; let XLA fuse.
_MIN_PALLAS_ELEMENTS = 1 << 20


def make_positional_embedding(context_size: int, embedding_dim: int, pe_n: float) -> jnp.ndarray:
    """Deterministic sinusoidal PE table, identical to the PyTorch __init__."""
    positions = jnp.arange(context_size, dtype=jnp.float32)[:, None]            # (C, 1)
    div_term = jnp.exp(
        jnp.arange(0, embedding_dim, 2, dtype=jnp.float32)
        * -(jnp.log(jnp.float32(pe_n)) / embedding_dim)
    )[None, :]                                                                    # (1, D/2)
    pe = jnp.zeros((context_size, embedding_dim), dtype=jnp.float32)
    pe = pe.at[:, 0::2].set(jnp.sin(positions * div_term))
    pe = pe.at[:, 1::2].set(jnp.cos(positions * div_term))
    return pe


def _add_pe_kernel(x_ref, pe_ref, o_ref):
    # x_ref: (tile_b, tile_c) lane-dense tile; pe_ref: (1, tile_c) block whose
    # row index is constant across the batch grid axis (stays VMEM-resident).
    # Plain broadcasted VPU add; the kernel is DMA-bound so VALU slack hides
    # the 1 -> tile_b sublane broadcast.
    o_ref[...] = x_ref[...] + pe_ref[...]


def _vmem_config():
    """(tile budget bytes, vmem_limit_bytes) chosen per TPU generation."""
    cap = None
    try:
        cap = getattr(pltpu.get_tpu_info(), "vmem_capacity_bytes", None)
    except Exception:
        cap = None
    if cap is None:
        cap = 64 * 1024 * 1024  # unknown -> assume the tightest part (v7x)
    if cap >= 96 * 1024 * 1024:
        # v5e / v6e: 128 MiB physical VMEM -> bigger tiles amortize per-step overhead.
        return 48 * 1024 * 1024, 64 * 1024 * 1024
    # v7x: 64 MiB physical, 32 MiB scoped default.
    return 16 * 1024 * 1024, 32 * 1024 * 1024


def _sublane_multiple(dtype) -> int:
    """Native sublane packing multiple for the (8,128) f32 / (16,128) bf16 / (32,128) int8 tiles."""
    bits = jnp.dtype(dtype).itemsize * 8
    if bits >= 32:
        return 8
    if bits == 16:
        return 16
    return 32


def _round_down(v: int, m: int) -> int:
    return max(m, (v // m) * m)


def _choose_tiles(B, row, itemsize, sublane, budget, tile_rows, tile_cols):
    """Pick (tile_b, tile_c) honoring VMEM budget, (sublane,128) layout, and >=2 grid steps."""
    # ---- lane (last-dim) tile ----
    if tile_cols is not None:
        tile_c = row if tile_cols >= row else _round_down(tile_cols, 128)
        tile_c = min(tile_c, row)
    elif 4 * sublane * row * itemsize <= budget or row <= 128:
        tile_c = row                                     # full-extent block (lane-dense)
    else:
        # Row too big for one block: tile the lane dim in large multiples of 128.
        tile_c = _round_down(budget // (4 * sublane * itemsize), 128)
        tile_c = min(tile_c, _round_down(row, 128))

    # ---- sublane (row) tile ----
    # 2x double-buffered (input tile + output tile) must fit the budget; pe block is tiny.
    max_rows = _round_down(budget // (4 * tile_c * itemsize), sublane)

    if tile_rows is not None:
        tile_b = tile_rows if tile_rows >= B else _round_down(tile_rows, sublane)
        return min(tile_b, B), tile_c

    if B <= sublane:
        return B, tile_c                                 # single full-extent block

    rows_target = -(-B // 8)                             # aim for >= 8 grid steps
    rows_1mib = _round_down((1 << 20) // (tile_c * itemsize), sublane)
    tile_b = max(min(rows_target, max_rows), min(rows_1mib, max_rows))
    tile_b = _round_down(tile_b, sublane)
    if tile_b >= B:
        # Never a single grid step when B > sublane: keeps the read/compute/
        # writeback pipeline alive and lets v7x shard the axis over both TCs.
        tile_b = _round_down(-(-B // 2), sublane)
    return min(tile_b, max_rows), tile_c


def _pe_add_pallas(x, pe_slice, *, tile_rows=None, tile_cols=None, donate_x=False):
    """Lane-dense tiled broadcast add: x (B, S, D) + pe_slice (S, D)."""
    B, S, D = x.shape
    row = S * D
    x2 = x.reshape(B, row)
    pe_row = pe_slice.reshape(1, row)

    budget, vmem_limit = _vmem_config()
    itemsize = jnp.dtype(x.dtype).itemsize
    sublane = _sublane_multiple(x.dtype)

    tile_b, tile_c = _choose_tiles(B, row, itemsize, sublane, budget, tile_rows, tile_cols)
    grid = (pl.cdiv(B, tile_b), pl.cdiv(row, tile_c))

    kwargs = {}
    if donate_x:
        # Reuse x's HBM buffer for the output (no extra allocation). The caller's
        # x stays valid outside jit (XLA inserts a protective copy if needed).
        kwargs["input_output_aliases"] = {0: 0}

    out2 = pl.pallas_call(
        _add_pe_kernel,
        out_shape=jax.ShapeDtypeStruct((B, row), x.dtype),
        grid_spec=pl.GridSpec(
            grid=grid,
            in_specs=[
                pl.BlockSpec((tile_b, tile_c), lambda i, j: (i, j)),
                pl.BlockSpec((1, tile_c), lambda i, j: (0, j)),  # constant over batch axis
            ],
            out_specs=pl.BlockSpec((tile_b, tile_c), lambda i, j: (i, j)),
        ),
        compiler_params=pltpu.CompilerParams(
            dimension_semantics=("parallel", "parallel"),
            vmem_limit_bytes=vmem_limit,
        ),
        **kwargs,
    )(x2, pe_row)
    return out2.reshape(B, S, D)


def positional_embedding_forward(
    x: jnp.ndarray,
    pe: jnp.ndarray,
    *,
    min_pallas_elements: int = _MIN_PALLAS_ELEMENTS,
    tile_rows=None,
    tile_cols=None,
    donate_x: bool = False,
) -> jnp.ndarray:
    """x: (B, S, D); returns x + pe[:S, :] (broadcast over batch)."""
    B, S, D = x.shape
    assert S <= pe.shape[0], "sequence length exceeds CONTEXT_SIZE"
    pe_slice = pe[:S, :].astype(x.dtype)   # cast once in wrapper (no per-tile converts)
    if B * S * D < min_pallas_elements and tile_rows is None and tile_cols is None:
        # Tiny problem: launch overhead dominates; let XLA fuse the add.
        return x + pe_slice[None, :, :]
    return _pe_add_pallas(x, pe_slice, tile_rows=tile_rows, tile_cols=tile_cols,
                          donate_x=donate_x)


if __name__ == "__main__":
    key = jax.random.PRNGKey(0)
    pe = make_positional_embedding(CONTEXT_SIZE, EMBEDDING_DIM, PE_N)

    # Module-consistent small shapes: batch=2, seq=8, hidden=32.
    B, S, D = 2, 8, EMBEDDING_DIM
    x = jax.random.normal(key, (B, S, D), dtype=jnp.float32)
    ref = x + pe[:S, :][None, :, :]

    # 1) Force the Pallas kernel at the small size (single lane-dense (2, 256) block).
    out = jax.block_until_ready(positional_embedding_forward(x, pe, min_pallas_elements=0))
    assert out.shape == (B, S, D)
    assert jnp.allclose(out, ref, atol=1e-6), "mismatch vs reference (small case)"

    # 2) Multi-step batch grid (grid=(4,1)) with output aliased onto x's buffer.
    B2 = 32
    x2 = jax.random.normal(jax.random.PRNGKey(1), (B2, CONTEXT_SIZE, EMBEDDING_DIM), jnp.float32)
    ref2 = x2 + pe[None, :, :]
    out2 = jax.block_until_ready(
        positional_embedding_forward(x2, pe, min_pallas_elements=0, tile_rows=8, donate_x=True))
    assert jnp.allclose(out2, ref2, atol=1e-6), "mismatch vs reference (tiled + aliased)"

    # 3) Two-axis grid: lane dim tiled into 128-wide blocks (grid=(4,4)); pe block follows j.
    out3 = jax.block_until_ready(
        positional_embedding_forward(x2, pe, min_pallas_elements=0, tile_rows=8, tile_cols=128))
    assert jnp.allclose(out3, ref2, atol=1e-6), "mismatch vs reference (lane-tiled)"

    # 4) Auto tile selection (no overrides) + bf16 (dtype-aware sublane rounding, tile_b=32).
    B4 = 64
    x4 = jax.random.normal(jax.random.PRNGKey(2), (B4, CONTEXT_SIZE, EMBEDDING_DIM), jnp.float32)
    ref4 = x4 + pe[None, :, :]
    out4 = jax.block_until_ready(positional_embedding_forward(x4, pe, min_pallas_elements=0))
    assert jnp.allclose(out4, ref4, atol=1e-6), "mismatch vs reference (auto tiles, f32)"

    x5 = x4.astype(jnp.bfloat16)
    ref5 = x5 + pe[None, :, :].astype(jnp.bfloat16)
    out5 = jax.block_until_ready(positional_embedding_forward(x5, pe, min_pallas_elements=0))
    assert out5.dtype == jnp.bfloat16
    assert jnp.allclose(out5.astype(jnp.float32), ref5.astype(jnp.float32), atol=2e-2), \
        "mismatch vs reference (bf16)"

    # 5) Default dispatch (tiny size -> fused XLA add path).
    out6 = jax.block_until_ready(positional_embedding_forward(x, pe))
    assert jnp.allclose(out6, ref, atol=1e-6), "mismatch vs reference (fused path)"

    print("KERNEL_OK")
</pallas_src>

<mosaic_0001>
module attributes {stable_mosaic.version = 11 : i64} {
  func.func @_add_pe_kernel(%arg0: i32, %arg1: i32, %arg2: memref<2x256xf32, #tpu.memory_space<vmem>>, %arg3: memref<1x256xf32, #tpu.memory_space<vmem>>, %arg4: memref<2x256xf32, #tpu.memory_space<vmem>>) attributes {dimension_semantics = [#tpu.dimension_semantics<parallel>, #tpu.dimension_semantics<parallel>], iteration_bounds = array<i64: 1, 1>, scalar_prefetch = 0 : i64, scratch_operands = 0 : i64, tpu.core_type = #tpu.core_type<tc>, window_params = [{transform_indices = @transform_0, window_bounds = array<i64: 2, 256>}, {transform_indices = @transform_1, window_bounds = array<i64: 1, 256>}, {transform_indices = @transform_2, window_bounds = array<i64: 2, 256>}]} {
    %c0 = arith.constant 0 : index
    %c0_0 = arith.constant 0 : index
    %0 = vector.load %arg2[%c0, %c0_0] : memref<2x256xf32, #tpu.memory_space<vmem>>, vector<2x256xf32>
    %c0_1 = arith.constant 0 : index
    %c0_2 = arith.constant 0 : index
    %1 = vector.load %arg3[%c0_1, %c0_2] : memref<1x256xf32, #tpu.memory_space<vmem>>, vector<1x256xf32>
    %2 = vector.broadcast %1 : vector<1x256xf32> to vector<2x256xf32>
    %3 = arith.addf %0, %2 : vector<2x256xf32>
    %c0_3 = arith.constant 0 : index
    %c0_4 = arith.constant 0 : index
    %4 = vector.load %arg4[%c0_3, %c0_4] : memref<2x256xf32, #tpu.memory_space<vmem>>, vector<2x256xf32>
    tpu.vector_store %arg4[%c0_3, %c0_4], %3 {strides = array<i32>} : memref<2x256xf32, #tpu.memory_space<vmem>>, vector<2x256xf32>,
    return
  }
  func.func @transform_0(%arg0: i32, %arg1: i32) -> (i32, i32) {
    %c0_i32 = arith.constant 0 : i32
    return %arg0, %arg1 : i32, i32
  }
  func.func @transform_1(%arg0: i32, %arg1: i32) -> (i32, i32) {
    %c0_i32 = arith.constant 0 : i32
    %c0_i32_0 = arith.constant 0 : i32
    return %c0_i32, %arg1 : i32, i32
  }
  func.func @transform_2(%arg0: i32, %arg1: i32) -> (i32, i32) {
    %c0_i32 = arith.constant 0 : i32
    return %arg0, %arg1 : i32, i32
  }
}

</mosaic_0001>

<bundles_post_ra>
// kernel: tpu_custom_call.1
= control target key start
LH: loop header
LB: loop body
LE: loop exit
PB: predicated region body
PF: predicated region fallthrough
CT: control target
= control target key end

     0   :  { %7 = vsyncpa [#allocation3], 0  ;;  %s157_s0 = inlined_call_operand.hbm [shape: f32[2,256], index: 0, kind: input, shape index: {}]   ;;  %s158_s1 = inlined_call_operand.vmem [shape: f32[1,256], index: 1, kind: input, shape index: {}]   ;;  %s159_s2 = inlined_call_operand.hbm [shape: f32[2,256], index: 2, kind: output, shape index: {}]  }
   0x1   :  { %8 = vsyncpa [#allocation4], 0  ;;  %s112_s9 = smov [#allocation2]   ;;  %s64_s13 = scalar_lea.hbm %s157_s0, 64 }
   0x2   :  { %s15_s10 = sshll.u32 %s112_s9, 4  ;;  %p65_p0 = scmp.ne.s32.totalorder %s157_s0, %s64_s13  ;;  %s16_s10 = int_to_ptr.vmem [resolvable:$true] %s15_s10 }
   0x3   :  { %p68_p1 = scmp.lt.u32.totalorder %s64_s13, %s157_s0 }
   0x5   :  { %p70_p2 = pnand %p68_p1, %p65_p0 }
   0x7   :  { %73 = shalt.err (!%p70_p2)
}
   0x8   :  { %s74_s18 = scalar_lea.vmem %s16_s10, 64  ;;  %p79_p4 = scmp.lt.s32.totalorder %s16_s10, %s16_s10 }
   0x9   :  { %p75_p3 = scmp.ne.s32.totalorder %s16_s10, %s74_s18  ;;  %p80_p5 = scmp.lt.s32.totalorder %s74_s18, %s74_s18 }
   0xb   :  { %p81_p6 = por %p80_p5, %p79_p4 }
   0xd   :  { %p82_p7 = pnand %p81_p6, %p75_p3 }
   0xf   :  { %85 = shalt.err (!%p82_p7)
}
  0x10   :  { %18 = dma.hbm_to_vmem [thread:$0]  %s157_s0, 64, %s16_s10, [#allocation3]  }
  0x11   :  { %108 = dma.done.wait [#allocation3], 64  }
  0x12   :  { %109 = vsyncadd [#allocation3], 4294967232  ;;  %v27_v0 = vlaneseq  ;;  %v113_v1 = vmov 1983009808   ;;  %v25_v7 = vld [vmem:[%s158_s1] sm:$0x3] }
  0x13   :  { %v37_v2 = vunpack.c.l.s4 %v113_v1  ;;  %v24_v12 = vld [vmem:[#allocation2] sm:$0xf]  ;;  %s114_s23 = smov [#allocation5]  }
  0x14   :  { %v28_v3 = vshrl.u32 %v27_v0, 7  ;;  %s52_s0 = sshll.u32 %s114_s23, 4  ;;  %s53_s0 = int_to_ptr.vmem [resolvable:$true] %s52_s0 }
  0x15   :  { %v38_v6 = vunpack.c.0.s8 %v37_v2  ;;  %s86_s24 = scalar_lea.vmem %s53_s0, 64  ;;  %p91_p9 = scmp.lt.s32.totalorder %s53_s0, %s53_s0 }
  0x16   :  { %v29_v4 = vsub.s32 0, %v28_v3  ;;  %v33_v5 = vsub.s32 1, %v28_v3  ;;  %p87_p8 = scmp.ne.s32.totalorder %s53_s0, %s86_s24  ;;  %p92_p10 = scmp.lt.s32.totalorder %s86_s24, %s86_s24 }
  0x17   :  { %v41_v10 = vsub.s32 %v38_v6, %v28_v3 }
  0x18   :  { %v30_v8 = vrot.slane %v25_v7, %v29_v4  ;;  %v34_v9 = vrot.slane %v25_v7, %v33_v5  ;;  %p93_p11 = por %p92_p10, %p91_p9 }
  0x1a   :  { %v35_v11 = vcombine.low %v30_v8, %v34_v9  ;;  %p94_p12 = pnand %p93_p11, %p87_p8 }
  0x1c   :  { %v42_v13 = vrot.slane %v35_v11, %v41_v10 }
  0x1e   :  { %v44_v14 = vadd.f32 %v42_v13, %v24_v12 }
  0x20   :  { %45 = vst [vmem:[#allocation5] sm:$0xf] %v44_v14 }
  0x21   :  { %97 = shalt.err (!%p94_p12)
}
  0x22   :  { %s98_s26 = scalar_lea.hbm %s159_s2, 64 }
  0x23   :  { %p99_p13 = scmp.ne.s32.totalorder %s159_s2, %s98_s26  ;;  %p102_p0 = scmp.lt.u32.totalorder %s98_s26, %s159_s2 }
  0x25   :  { %p104_p1 = pnand %p102_p0, %p99_p13 }
  0x27   :  { %107 = shalt.err (!%p104_p1)
}
  0x28   :  { %55 = dma.vmem_to_hbm [thread:$0]  %s53_s0, 64, %s159_s2, [#allocation4]  }
  0x29   :  { %110 = dma.done.wait [#allocation4], 64  }
  0x2a   :  { %111 = vsyncadd [#allocation4], 4294967232 }
  0x2b   :  { %59 = vsyncpa [#allocation3], 1 }
  0x2c   :  { %60 = vsyncpa [#allocation4], 1 }

</bundles_post_ra>
